<compile_context>
chip_gen: v6e
topology: v6e:2x2x1
jax: 0.10.0
libtpu: 0.0.40
codegen_flags: <defaults>
</compile_context>

<pallas_src>
import jax
import jax.numpy as jnp
from jax.experimental import pallas as pl
from jax.experimental.pallas import tpu as pltpu


def _round_up(x, m):
    return ((x + m - 1) // m) * m


def critic_mlp_kernel(s_ref, a_ref, w1s_ref, w1a_ref, b1_ref,
                      w2_ref, b2_ref, w3_ref, b3_ref, o_ref):
    # In-kernel bf16 casts of the streamed activations: VPU work hidden under
    # MXU slack, avoids an extra XLA cast pass over HBM in the wrapper.
    s = s_ref[...].astype(jnp.bfloat16)                     # (TB, Ds)
    a = a_ref[...].astype(jnp.bfloat16)                     # (TB, Da)

    # Layer 1: in-kernel "concat" as a split matmul, bf16 MXU / f32 accumulate.
    h1 = jnp.dot(s, w1s_ref[...], preferred_element_type=jnp.float32)
    h1 = h1 + jnp.dot(a, w1a_ref[...], preferred_element_type=jnp.float32)
    h1 = jnp.maximum(h1 + b1_ref[...], 0.0)                 # bias + ReLU in f32 (VPU)

    # Layer 2: (TB, H) @ (H, H), bf16 MXU operands / f32 accumulate.
    h2 = jnp.dot(h1.astype(jnp.bfloat16), w2_ref[...],
                 preferred_element_type=jnp.float32)
    h2 = jnp.maximum(h2 + b2_ref[...], 0.0)                 # bias + ReLU in f32 (VPU)

    # Layer 3: N=1 head -> f32 VPU multiply + XLU lane reduce (no N=1 MXU pass).
    q = jnp.sum(h2 * w3_ref[...], axis=-1, keepdims=True) + b3_ref[...]
    o_ref[...] = q.astype(o_ref.dtype)                      # (TB, 1)


def critic_net_forward(state, action, params, *, block_b=512):
    """state: (B, state_dim), action: (B, action_dim) -> q: (B, 1) f32."""
    w1s, w1a, b1, w2, b2, w3, b3 = params
    B, Ds = state.shape
    Da = action.shape[1]
    H = w1s.shape[1]

    # Batch tile: multiple of 8 (sublane), capped at block_b (default 512).
    # Aim for >= 2 grid steps so the "parallel" axis can shard across both
    # TensorCores on v7x; the cost on 1-TC chips is one extra ~0.35 us step.
    half = _round_up(max(pl.cdiv(B, 2), 1), 8)
    TB = max(8, min(block_b, half))
    Bp = _round_up(B, TB)
    if Bp != B:
        pad = Bp - B
        state = jnp.pad(state, ((0, pad), (0, 0)))
        action = jnp.pad(action, ((0, pad), (0, 0)))

    grid = (Bp // TB,)

    out = pl.pallas_call(
        critic_mlp_kernel,
        out_shape=jax.ShapeDtypeStruct((Bp, 1), jnp.float32),
        grid_spec=pltpu.PrefetchScalarGridSpec(
            num_scalar_prefetch=0,
            grid=grid,
            in_specs=[
                pl.BlockSpec((TB, Ds), lambda i: (i, 0)),   # state tile (streams)
                pl.BlockSpec((TB, Da), lambda i: (i, 0)),   # action tile (streams)
                pl.BlockSpec((Ds, H), lambda i: (0, 0)),    # w1_s bf16 (resident)
                pl.BlockSpec((Da, H), lambda i: (0, 0)),    # w1_a bf16 (resident)
                pl.BlockSpec((1, H), lambda i: (0, 0)),     # b1 f32
                pl.BlockSpec((H, H), lambda i: (0, 0)),     # w2 bf16 (resident)
                pl.BlockSpec((1, H), lambda i: (0, 0)),     # b2 f32
                pl.BlockSpec((1, H), lambda i: (0, 0)),     # w3 f32 lane row
                pl.BlockSpec((1, 1), lambda i: (0, 0)),     # b3 f32
            ],
            out_specs=pl.BlockSpec((TB, 1), lambda i: (i, 0)),
        ),
        compiler_params=pltpu.CompilerParams(
            dimension_semantics=("parallel",),
        ),
    )(state, action, w1s, w1a, b1, w2, b2, w3, b3)

    # Padded tail rows carry garbage (biases propagate through ReLU); never
    # consume anything past out[:B].
    return out[:B]


def init_params(key, state_dim, action_dim, hidden_dim):
    """nn.Linear-style init (uniform +-1/sqrt(fan_in)).

    Weights stored transposed (in_features, out_features).  Linear1 is split
    into (state_dim, H) and (action_dim, H) blocks for the fused concat.
    Matmul weights (w1s, w1a, w2) are stored bf16 for the MXU; biases and the
    (1, H) head row w3 stay f32 (VPU path).
    """
    d_in = state_dim + action_dim

    def linear(k, fan_in, fan_out):
        kw, kb = jax.random.split(k)
        bound = 1.0 / jnp.sqrt(float(fan_in))
        w = jax.random.uniform(kw, (fan_in, fan_out), jnp.float32,
                               minval=-bound, maxval=bound)
        b = jax.random.uniform(kb, (1, fan_out), jnp.float32,
                               minval=-bound, maxval=bound)
        return w, b

    k1, k2, k3 = jax.random.split(key, 3)
    w1, b1 = linear(k1, d_in, hidden_dim)                    # (d_in, H)
    w1s = w1[:state_dim].astype(jnp.bfloat16)                # (Ds, H) bf16
    w1a = w1[state_dim:].astype(jnp.bfloat16)                # (Da, H) bf16
    w2, b2 = linear(k2, hidden_dim, hidden_dim)
    w2 = w2.astype(jnp.bfloat16)                             # (H, H) bf16
    w3, b3 = linear(k3, hidden_dim, 1)                       # (H, 1)
    w3_row = w3.T                                            # (1, H) f32 lane row
    return (w1s, w1a, b1, w2, b2, w3_row, b3)


def critic_net_reference_bf16(state, action, params):
    """Pure-JAX reference mirroring the kernel's bf16-operand / f32-accum math."""
    w1s, w1a, b1, w2, b2, w3_row, b3 = params
    s = state.astype(jnp.bfloat16)
    a = action.astype(jnp.bfloat16)
    h1 = (jnp.dot(s, w1s, preferred_element_type=jnp.float32)
          + jnp.dot(a, w1a, preferred_element_type=jnp.float32))
    h1 = jnp.maximum(h1 + b1, 0.0)
    h2 = jnp.dot(h1.astype(jnp.bfloat16), w2, preferred_element_type=jnp.float32)
    h2 = jnp.maximum(h2 + b2, 0.0)
    return jnp.sum(h2 * w3_row, axis=-1, keepdims=True) + b3


def critic_net_reference_f32(state, action, params):
    """Full-f32 reference of the PyTorch module (weights upcast from storage)."""
    w1s, w1a, b1, w2, b2, w3_row, b3 = params
    w1 = jnp.concatenate([w1s.astype(jnp.float32), w1a.astype(jnp.float32)], axis=0)
    x = jnp.concatenate([state, action], axis=1)
    h1 = jnp.maximum(x @ w1 + b1, 0.0)
    h2 = jnp.maximum(h1 @ w2.astype(jnp.float32) + b2, 0.0)
    return h2 @ w3_row.T + b3


if __name__ == "__main__":
    # Small shapes consistent with the module (hidden_dim=128 per the spec).
    batch = 50            # not a multiple of the tile -> exercises padding; grid = 2 steps
    state_dim = 16
    action_dim = 8
    hidden_dim = 128

    key = jax.random.PRNGKey(0)
    k_params, k_state, k_action = jax.random.split(key, 3)

    params = init_params(k_params, state_dim, action_dim, hidden_dim)
    state = jax.random.normal(k_state, (batch, state_dim), jnp.float32)
    action = jax.random.normal(k_action, (batch, action_dim), jnp.float32)

    q = critic_net_forward(state, action, params)
    q = jax.block_until_ready(q)
    assert q.shape == (batch, 1)

    # Tight check vs. a reference with identical bf16/f32 mixed-precision math.
    q_bf = critic_net_reference_bf16(state, action, params)
    err_bf = float(jnp.max(jnp.abs(q - q_bf)))
    assert err_bf < 2e-3, err_bf

    # Loose semantic check vs. the full-f32 module (bf16 rounding error only).
    q_f32 = critic_net_reference_f32(state, action, params)
    err_f32 = float(jnp.max(jnp.abs(q - q_f32)))
    assert err_f32 < 5e-2, err_f32

    print("KERNEL_OK")
</pallas_src>

<mosaic_0001>
module attributes {stable_mosaic.version = 11 : i64} {
  func.func @critic_mlp_kernel(%arg0: i32, %arg1: memref<32x16xf32, #tpu.memory_space<vmem>>, %arg2: memref<32x8xf32, #tpu.memory_space<vmem>>, %arg3: memref<16x128xbf16, #tpu.memory_space<vmem>>, %arg4: memref<8x128xbf16, #tpu.memory_space<vmem>>, %arg5: memref<1x128xf32, #tpu.memory_space<vmem>>, %arg6: memref<128x128xbf16, #tpu.memory_space<vmem>>, %arg7: memref<1x128xf32, #tpu.memory_space<vmem>>, %arg8: memref<1x128xf32, #tpu.memory_space<vmem>>, %arg9: memref<1x1xf32, #tpu.memory_space<vmem>>, %arg10: memref<32x1xf32, #tpu.memory_space<vmem>>) attributes {dimension_semantics = [#tpu.dimension_semantics<parallel>], iteration_bounds = array<i64: 2>, scalar_prefetch = 0 : i64, scratch_operands = 0 : i64, tpu.core_type = #tpu.core_type<tc>, window_params = [{transform_indices = @transform_0, window_bounds = array<i64: 32, 16>}, {transform_indices = @transform_1, window_bounds = array<i64: 32, 8>}, {pipeline_mode = #tpu.pipeline_mode<synchronous>, transform_indices = @transform_2, window_bounds = array<i64: 16, 128>}, {pipeline_mode = #tpu.pipeline_mode<synchronous>, transform_indices = @transform_3, window_bounds = array<i64: 8, 128>}, {pipeline_mode = #tpu.pipeline_mode<synchronous>, transform_indices = @transform_4, window_bounds = array<i64: 1, 128>}, {pipeline_mode = #tpu.pipeline_mode<synchronous>, transform_indices = @transform_5, window_bounds = array<i64: 128, 128>}, {pipeline_mode = #tpu.pipeline_mode<synchronous>, transform_indices = @transform_6, window_bounds = array<i64: 1, 128>}, {pipeline_mode = #tpu.pipeline_mode<synchronous>, transform_indices = @transform_7, window_bounds = array<i64: 1, 128>}, {pipeline_mode = #tpu.pipeline_mode<synchronous>, transform_indices = @transform_8, window_bounds = array<i64: 1, 1>}, {transform_indices = @transform_9, window_bounds = array<i64: 32, 1>}]} {
    %c0 = arith.constant 0 : index
    %c0_0 = arith.constant 0 : index
    %0 = vector.load %arg1[%c0, %c0_0] : memref<32x16xf32, #tpu.memory_space<vmem>>, vector<32x16xf32>
    %1 = arith.truncf %0 : vector<32x16xf32> to vector<32x16xbf16>
    %c0_1 = arith.constant 0 : index
    %c0_2 = arith.constant 0 : index
    %2 = vector.load %arg2[%c0_1, %c0_2] : memref<32x8xf32, #tpu.memory_space<vmem>>, vector<32x8xf32>
    %3 = arith.truncf %2 : vector<32x8xf32> to vector<32x8xbf16>
    %c0_3 = arith.constant 0 : index
    %c0_4 = arith.constant 0 : index
    %4 = vector.load %arg3[%c0_3, %c0_4] : memref<16x128xbf16, #tpu.memory_space<vmem>>, vector<16x128xbf16>
    %cst = arith.constant dense<0.000000e+00> : vector<32x128xf32>
    %5 = tpu.matmul %1, %4, %cst {dimension_numbers = #tpu.dot_dimension_numbers<[1], [0], [0], [1], [0, 0, 1, 1], [], []>} : vector<32x16xbf16>, vector<16x128xbf16>, vector<32x128xf32> -> vector<32x128xf32>
    %c0_5 = arith.constant 0 : index
    %c0_6 = arith.constant 0 : index
    %6 = vector.load %arg4[%c0_5, %c0_6] : memref<8x128xbf16, #tpu.memory_space<vmem>>, vector<8x128xbf16>
    %cst_7 = arith.constant dense<0.000000e+00> : vector<32x128xf32>
    %7 = tpu.matmul %3, %6, %cst_7 {dimension_numbers = #tpu.dot_dimension_numbers<[1], [0], [0], [1], [0, 0, 1, 1], [], []>} : vector<32x8xbf16>, vector<8x128xbf16>, vector<32x128xf32> -> vector<32x128xf32>
    %8 = arith.addf %5, %7 : vector<32x128xf32>
    %c0_8 = arith.constant 0 : index
    %c0_9 = arith.constant 0 : index
    %9 = vector.load %arg5[%c0_8, %c0_9] : memref<1x128xf32, #tpu.memory_space<vmem>>, vector<1x128xf32>
    %10 = vector.broadcast %9 : vector<1x128xf32> to vector<32x128xf32>
    %11 = arith.addf %8, %10 : vector<32x128xf32>
    %cst_10 = arith.constant 0.000000e+00 : f32
    %12 = vector.broadcast %cst_10 : f32 to vector<32x128xf32>
    %13 = arith.maximumf %11, %12 : vector<32x128xf32>
    %14 = arith.truncf %13 : vector<32x128xf32> to vector<32x128xbf16>
    %c0_11 = arith.constant 0 : index
    %c0_12 = arith.constant 0 : index
    %15 = vector.load %arg6[%c0_11, %c0_12] : memref<128x128xbf16, #tpu.memory_space<vmem>>, vector<128x128xbf16>
    %cst_13 = arith.constant dense<0.000000e+00> : vector<32x128xf32>
    %16 = tpu.matmul %14, %15, %cst_13 {dimension_numbers = #tpu.dot_dimension_numbers<[1], [0], [0], [1], [0, 0, 1, 1], [], []>} : vector<32x128xbf16>, vector<128x128xbf16>, vector<32x128xf32> -> vector<32x128xf32>
    %c0_14 = arith.constant 0 : index
    %c0_15 = arith.constant 0 : index
    %17 = vector.load %arg7[%c0_14, %c0_15] : memref<1x128xf32, #tpu.memory_space<vmem>>, vector<1x128xf32>
    %18 = vector.broadcast %17 : vector<1x128xf32> to vector<32x128xf32>
    %19 = arith.addf %16, %18 : vector<32x128xf32>
    %cst_16 = arith.constant 0.000000e+00 : f32
    %20 = vector.broadcast %cst_16 : f32 to vector<32x128xf32>
    %21 = arith.maximumf %19, %20 : vector<32x128xf32>
    %c0_17 = arith.constant 0 : index
    %c0_18 = arith.constant 0 : index
    %22 = vector.load %arg8[%c0_17, %c0_18] : memref<1x128xf32, #tpu.memory_space<vmem>>, vector<1x128xf32>
    %23 = vector.broadcast %22 : vector<1x128xf32> to vector<32x128xf32>
    %24 = arith.mulf %21, %23 : vector<32x128xf32>
    %cst_19 = arith.constant dense<0.000000e+00> : vector<32xf32>
    %25 = vector.multi_reduction <add>, %24, %cst_19 [1] : vector<32x128xf32> to vector<32xf32>
    %26 = vector.shape_cast %25 : vector<32xf32> to vector<32x1xf32>
    %c0_20 = arith.constant 0 : index
    %c0_21 = arith.constant 0 : index
    %27 = vector.load %arg9[%c0_20, %c0_21] : memref<1x1xf32, #tpu.memory_space<vmem>>, vector<1x1xf32>
    %28 = vector.broadcast %27 : vector<1x1xf32> to vector<32x1xf32>
    %29 = arith.addf %26, %28 : vector<32x1xf32>
    %c0_22 = arith.constant 0 : index
    %c0_23 = arith.constant 0 : index
    %30 = vector.load %arg10[%c0_22, %c0_23] : memref<32x1xf32, #tpu.memory_space<vmem>>, vector<32x1xf32>
    tpu.vector_store %arg10[%c0_22, %c0_23], %29 {strides = array<i32>} : memref<32x1xf32, #tpu.memory_space<vmem>>, vector<32x1xf32>,
    return
  }
  func.func @transform_0(%arg0: i32) -> (i32, i32) {
    %c0_i32 = arith.constant 0 : i32
    %c0_i32_0 = arith.constant 0 : i32
    return %arg0, %c0_i32 : i32, i32
  }
  func.func @transform_1(%arg0: i32) -> (i32, i32) {
    %c0_i32 = arith.constant 0 : i32
    %c0_i32_0 = arith.constant 0 : i32
    return %arg0, %c0_i32 : i32, i32
  }
  func.func @transform_2(%arg0: i32) -> (i32, i32) {
    %c0_i32 = arith.constant 0 : i32
    %c0_i32_0 = arith.constant 0 : i32
    %c0_i32_1 = arith.constant 0 : i32
    return %c0_i32, %c0_i32_0 : i32, i32
  }
  func.func @transform_3(%arg0: i32) -> (i32, i32) {
    %c0_i32 = arith.constant 0 : i32
    %c0_i32_0 = arith.constant 0 : i32
    %c0_i32_1 = arith.constant 0 : i32
    return %c0_i32, %c0_i32_0 : i32, i32
  }
  func.func @transform_4(%arg0: i32) -> (i32, i32) {
    %c0_i32 = arith.constant 0 : i32
    %c0_i32_0 = arith.constant 0 : i32
    %c0_i32_1 = arith.constant 0 : i32
    return %c0_i32, %c0_i32_0 : i32, i32
  }
  func.func @transform_5(%arg0: i32) -> (i32, i32) {
    %c0_i32 = arith.constant 0 : i32
    %c0_i32_0 = arith.constant 0 : i32
    %c0_i32_1 = arith.constant 0 : i32
    return %c0_i32, %c0_i32_0 : i32, i32
  }
  func.func @transform_6(%arg0: i32) -> (i32, i32) {
    %c0_i32 = arith.constant 0 : i32
    %c0_i32_0 = arith.constant 0 : i32
    %c0_i32_1 = arith.constant 0 : i32
    return %c0_i32, %c0_i32_0 : i32, i32
  }
  func.func @transform_7(%arg0: i32) -> (i32, i32) {
    %c0_i32 = arith.constant 0 : i32
    %c0_i32_0 = arith.constant 0 : i32
    %c0_i32_1 = arith.constant 0 : i32
    return %c0_i32, %c0_i32_0 : i32, i32
  }
  func.func @transform_8(%arg0: i32) -> (i32, i32) {
    %c0_i32 = arith.constant 0 : i32
    %c0_i32_0 = arith.constant 0 : i32
    %c0_i32_1 = arith.constant 0 : i32
    return %c0_i32, %c0_i32_0 : i32, i32
  }
  func.func @transform_9(%arg0: i32) -> (i32, i32) {
    %c0_i32 = arith.constant 0 : i32
    %c0_i32_0 = arith.constant 0 : i32
    return %arg0, %c0_i32 : i32, i32
  }
}

</mosaic_0001>

<bundles_post_ra>
// kernel: tpu_custom_call.1
= control target key start
LH: loop header
LB: loop body
LE: loop exit
PB: predicated region body
PF: predicated region fallthrough
CT: control target
= control target key end

     0   :  { %s899_s11 = smov 0   ;;  %s963_s0 = inlined_call_operand.vmem [shape: f32[64,16], index: 0, kind: input, shape index: {}]   ;;  %s964_s1 = inlined_call_operand.vmem [shape: f32[64,8], index: 1, kind: input, shape index: {}]   ;;  %s965_s2 = inlined_call_operand.vmem [shape: bf16[16,128], index: 2, kind: input, shape index: {}]   ;;  %s966_s3 = inlined_call_operand.vmem [shape: bf16[8,128], index: 3, kind: input, shape index: {}]   ;;  %s967_s4 = inlined_call_operand.vmem [shape: f32[1,128], index: 4, kind: input, shape index: {}]   ;;  %s968_s5 = inlined_call_operand.vmem [shape: bf16[128,128], index: 5, kind: input, shape index: {}]   ;;  %s969_s6 = inlined_call_operand.vmem [shape: f32[1,128], index: 6, kind: input, shape index: {}]   ;;  %s970_s7 = inlined_call_operand.vmem [shape: f32[1,128], index: 7, kind: input, shape index: {}]   ;;  %s971_s8 = inlined_call_operand.<no memory space> [shape: f32[1,1], index: 8, kind: input, shape index: {}]   ;;  %s972_s9 = inlined_call_operand.vmem [shape: f32[64,1], index: 9, kind: output, shape index: {}]  }
   0x1   :  { %v14_v0 = vstv %s971_s8 }
   0x2   :  { %15 = vst [vmem:[#allocation2] sm:$0x1] %v14_v0 }
   0x3 LB: > { %s742_s12 = sadd.s32 4294967295, %s844_s11   ;;  %p746_p0 = scmp.ge.s32.totalorder %s844_s11, 1  ;;  %s844_s11 = sphi %s899_s11, %s21_s11  }
   0x4   : > { %p301_p1 = scmp.lt.s32.totalorder %s844_s11, 3 }
   0x6   : > { %p302_p2 = pnand %p746_p0, %p301_p1 }
   0x7   : > { %s747_s8 = sshll.u32 (!%p302_p2), %s742_s12, 2 }
   0x8   : > { %305 = sbr.rel (%p302_p2) target bundleno = 582 (0x246), region = 56  ;;  %p343_p3 = scmp.lt.s32.totalorder (!%p302_p2), %s747_s8, 7 }
   0xd   : > { %v375_v1 = vld [vmem:[%s966_s3] sm:$0xf]  ;;  %vm383_vm0 = vcmask 1043456   ;;  %v830_v4 = vld [vmem:[%s968_s5 + $0x38] sm:$0xff]   ;;  %s974_s8 = smov (!%p343_p3, %s747_s8), 7  ;;  %v831_v5 = vld [vmem:[%s968_s5 + $0x30] sm:$0xff]  }
   0xe   : > { %v829_v2 = vld [vmem:[%s965_s2] sm:$0xff]   ;;  %820 = vmatprep.subr.msk.bf16.mxu1 %vm383_vm0, %v375_v1  ;;  %v385_v3 = vsel %vm383_vm0, %v375_v1, 0  ;;  %800 = vmatprep.subr.bf16.mxu0 %v830_v4  ;;  %s919_s21 = sshll.u32 %s974_s8, 3  ;;  %vm376_vm1 = vcmask 64512   ;;  %vm442_vm2 = vcmask 130048   ;;  %v832_v18 = vld [vmem:[%s968_s5 + $0x28] sm:$0xff]  }
   0xf   : > { %789 = vmatpush3.bf16.msra.mxu1 %v385_v3  ;;  %801 = vmatpush3.bf16.msra.mxu0 %v830_v4  ;;  %s346_s24 = scalar_lea.vmem %s963_s0, %s919_s21  ;;  %s352_s27 = scalar_lea.vmem %s964_s1, %s919_s21  ;;  %v833_v19 = vld [vmem:[%s968_s5 + $0x20] sm:$0xff]   ;;  %v834_v20 = vld [vmem:[%s968_s5 + $0x18] sm:$0xff]   ;;  %v835_v21 = vld [vmem:[%s968_s5 + $0x10] sm:$0xff]   ;;  %vm669_vm3 = vcmask 7168  }
  0x10   : > { %794 = vmatprep.subr.bf16.mxu1 %v829_v2  ;;  %802 = vmatprep.subr.bf16.mxu0 %v831_v5  ;;  %v367_v6 = vld [vmem:[%s352_s27] sm:$0xff]  ;;  %v368_v7 = vld [vmem:[%s352_s27 + $0x8] sm:$0xff]  ;;  %v369_v8 = vld [vmem:[%s352_s27 + $0x10] sm:$0xff]  ;;  %s358_s28 = scalar_lea.vmem %s972_s9, %s919_s21 }
  0x11   : > { %v371_v9 = vpack.c.bf16 %v368_v7, %v367_v6  ;;  %v370_v10 = vld [vmem:[%s352_s27 + $0x18] sm:$0xff]  ;;  %v361_v11 = vld [vmem:[%s346_s24] sm:$0xff]  ;;  %v362_v12 = vld [vmem:[%s346_s24 + $0x8] sm:$0xff] }
  0x12   : > { %v372_v13 = vpack.c.bf16 %v370_v10, %v369_v8  ;;  %v365_v14 = vpack.c.bf16 %v362_v12, %v361_v11  ;;  %v363_v15 = vld [vmem:[%s346_s24 + $0x10] sm:$0xff]  ;;  %v364_v16 = vld [vmem:[%s346_s24 + $0x18] sm:$0xff]  ;;  %v836_v22 = vld [vmem:[%s968_s5 + $0x8] sm:$0xff]  }
  0x13   : > { %803 = vmatpush3.bf16.msra.mxu0 %v831_v5  ;;  %790 = vmatprep.mubr.msk.bf16.mxu1 %vm376_vm1, %v371_v9  ;;  %v366_v17 = vpack.c.bf16 %v364_v16, %v363_v15  ;;  %v837_v23 = vld [vmem:[%s968_s5] sm:$0xff]  }
  0x14   : > { %791 = vmatmul.mubr.msk.bf16.vlgmr.msra.gmra.mxu1 %vm376_vm1, %v372_v13  ;;  %804 = vmatprep.subr.bf16.mxu0 %v832_v18  ;;  %v758_v33 = vld [vmem:[%s967_s4] ss:$0 sm:$0xff] }
  0x15   : > { %795 = vmatpush3.bf16.msra.mxu1 %v829_v2  ;;  %796 = vmatprep.mubr.msk.bf16.mxu1 %vm442_vm2, %v365_v14  ;;  %v759_v47 = vld [vmem:[%s969_s6] ss:$0 sm:$0xff] }
  0x16   : > { %v768_v51 = vld [vmem:[%s970_s7] ss:$0 sm:$0xff] }
  0x17   : > { %805 = vmatpush3.bf16.msra.mxu0 %v832_v18  ;;  %v769_v2 = vld [vmem:[#allocation2] ss:$0 sm:$0xff] }
  0x18   : > { %806 = vmatprep.subr.bf16.mxu0 %v833_v19 }
  0x1b   : > { %807 = vmatpush3.bf16.msra.mxu0 %v833_v19 }
  0x1c   : > { %797 = vmatmul.mubr.msk.bf16.vlgmr.msra.gmra.mxu1 %vm442_vm2, %v366_v17  ;;  %808 = vmatprep.subr.bf16.mxu0 %v834_v20 }
  0x1f   : > { %809 = vmatpush3.bf16.msra.mxu0 %v834_v20 }
  0x20   : > { %810 = vmatprep.subr.bf16.mxu0 %v835_v21 }
  0x23   : > { %811 = vmatpush3.bf16.msra.mxu0 %v835_v21 }
  0x24   : > { %812 = vmatprep.subr.bf16.mxu0 %v836_v22 }
  0x27   : > { %813 = vmatpush3.bf16.msra.mxu0 %v836_v22 }
  0x28   : > { %814 = vmatprep.subr.bf16.mxu0 %v837_v23 }
  0x2b   : > { %815 = vmatpush3.bf16.msra.mxu0 %v837_v23 }
  0xd4   : > { %v792_v24 = vpop.f32.mrf.mxu1 }
  0xd6   : > { %v421_v25 = vpop.f32.mrf.mxu1 }
  0xd8   : > { %v793_v26 = vpop.f32.mrf.mxu1 }
  0xda   : > { %v424_v27 = vpop.f32.mrf.mxu1 }
  0xdc   : > { %v798_v28 = vpop.f32.mrf.mxu1 }
  0xdd   : > { %v492_v31 = vadd.f32 %v798_v28, %v792_v24 }
  0xde   : > { %v483_v29 = vpop.f32.mrf.mxu1 }
  0xdf   : > { %v484_v30 = vadd.f32 %v483_v29, %v421_v25  ;;  %v507_v39 = vadd.f32 %v758_v33, %v492_v31 }
  0xe0   : > { %v799_v32 = vpop.f32.mrf.mxu1 }
  0xe1   : > { %v495_v34 = vadd.f32 %v799_v32, %v793_v26  ;;  %v505_v38 = vadd.f32 %v758_v33, %v484_v30  ;;  %v511_v44 = vmax.f32 %v507_v39, 0.0 }
  0xe2   : > { %v486_v35 = vpop.f32.mrf.mxu1 }
  0xe3   : > { %v508_v36 = vadd.f32 %v758_v33, %v495_v34  ;;  %v487_v37 = vadd.f32 %v486_v35, %v424_v27  ;;  %v509_v42 = vmax.f32 %v505_v38, 0.0 }
  0xe5   : > { %v506_v40 = vadd.f32 %v758_v33, %v487_v37  ;;  %v512_v41 = vmax.f32 %v508_v36, 0.0 }
  0xe7   : > { %v510_v43 = vmax.f32 %v506_v40, 0.0  ;;  %v514_v46 = vpack.c.bf16 %v512_v41, %v511_v44 }
  0xe9   : > { %v513_v45 = vpack.c.bf16 %v510_v43, %v509_v42 }
  0xeb   : > { %816 = vmatprep.mubr.bf16.mxu0 %v513_v45 }
  0xec   : > { %817 = vmatmul.mubr.bf16.vlgmr.msra.gmra.mxu0 %v514_v46 }
 0x1ac   : > { %v818_v48 = vpop.f32.mrf.mxu0 }
 0x1ad   : > { %v629_v49 = vadd.f32 %v818_v48, %v759_v47 }
 0x1ae   : > { %v620_v50 = vpop.f32.mrf.mxu0 }
 0x1af   : > { %v637_v52 = vmax.f32 %v629_v49, 0.0  ;;  %v621_v53 = vadd.f32 %v759_v47, %v620_v50 }
 0x1b0   : > { %v819_v54 = vpop.f32.mrf.mxu0 }
 0x1b1   : > { %v635_v55 = vmax.f32 %v621_v53, 0.0  ;;  %v632_v56 = vadd.f32 %v819_v54, %v759_v47  ;;  %v648_v57 = vmul.f32 %v768_v51, %v637_v52 }
 0x1b2   : > { %v623_v58 = vpop.f32.mrf.mxu0 }
 0x1b3   : > { %v638_v59 = vmax.f32 %v632_v56, 0.0  ;;  %v624_v60 = vadd.f32 %v759_v47, %v623_v58  ;;  %654 = vadd.xlane.f32.xlu1 %v648_v57  ;;  %v646_v61 = vmul.f32 %v768_v51, %v635_v55 }
 0x1b5   : > { %v636_v62 = vmax.f32 %v624_v60, 0.0  ;;  %650 = vadd.xlane.f32.xlu0 %v646_v61  ;;  %v649_v63 = vmul.f32 %v768_v51, %v638_v59 }
 0x1b7   : > { %656 = vadd.xlane.f32.xlu1 %v649_v63  ;;  %v647_v0 = vmul.f32 %v768_v51, %v636_v62 }
 0x1b9   : > { %652 = vadd.xlane.f32.xlu0 %v647_v0 }
 0x23c   : > { %v655_v1 = vpop.xlane.xlu1 %654 }
 0x23d   : > { %v667_v8 = vadd.f32 %v769_v2, %v655_v1 }
 0x23e   : > { %v651_v3 = vpop.xlane.xlu0 %650 }
 0x23f   : > { %v665_v4 = vadd.f32 %v769_v2, %v651_v3  ;;  %672 = vst.msk [vmem:[%s358_s28 + $0x10] sm:$0xff] %vm669_vm3, %v667_v8 }
 0x240   : > { %v657_v5 = vpop.xlane.xlu1 %656 }
 0x241   : > { %670 = vst.msk [vmem:[%s358_s28] sm:$0xff] %vm669_vm3, %v665_v4  ;;  %v668_v9 = vadd.f32 %v769_v2, %v657_v5 }
 0x242   : > { %v653_v6 = vpop.xlane.xlu0 %652 }
 0x243   : > { %v666_v7 = vadd.f32 %v769_v2, %v653_v6  ;;  %673 = vst.msk [vmem:[%s358_s28 + $0x18] sm:$0xff] %vm669_vm3, %v668_v9 }
 0x245   : > { %671 = vst.msk [vmem:[%s358_s28 + $0x8] sm:$0xff] %vm669_vm3, %v666_v7 }
 0x246 PF: > { %s21_s11 = sadd.s32 1, %s844_s11  }
 0x247   : > { %p18_p4 = scmp.ge.s32.totalorder %s21_s11, 4  }
 0x249   :  { %20 = sbr.rel (!%p18_p4) target bundleno = 3 (0x3), region = 89 }

</bundles_post_ra>
